<compile_context>
chip_gen: v6e
topology: v6e:2x2x1
jax: 0.10.0
libtpu: 0.0.40
codegen_flags: <defaults>
</compile_context>

<pallas_src>
import jax
import jax.numpy as jnp
from jax.experimental import pallas as pl
from jax.experimental.pallas import tpu as pltpu

IGNORE_LABEL = 255
LOSS_WEIGHT = 1.0
_MIB = 1024 * 1024


def _make_ce_kernel(hw, tm, need_tail):
    def kernel(logits_ref, tgt_ref, out_ref):
        # logits_ref: (1, C, tm) input dtype, tgt_ref: (1, 1, tm) int, out: (1,1,1,2) f32
        x = logits_ref[0]                                  # (C, tm), lane-dense pixels
        tgt = tgt_ref[0].astype(jnp.int32)                 # (1, tm)
        C = x.shape[0]

        valid = tgt != IGNORE_LABEL                        # (1, tm)
        if need_tail:
            # last block of a non-dividing spatial extent: mask the tail lanes
            j = pl.program_id(1)
            lane = jax.lax.broadcasted_iota(jnp.int32, (1, tm), 1)
            valid = jnp.logical_and(valid, lane < (hw - j * tm))

        # numerically stable log-sum-exp over the class (sublane) axis.
        # xm = x - m is the single big f32 temp; lse and the picked logit both
        # reuse it and the m term cancels in the final CE.
        m = jnp.max(x, axis=0, keepdims=True)              # (1, tm), input dtype
        xm = (x - m).astype(jnp.float32)                   # (C, tm) f32

        sum_e = jnp.sum(jnp.exp(xm), axis=0, keepdims=True)          # (1, tm)

        # one-hot select of the target class: tiny (C,1) iota broadcast-compared
        # against the (1,tm) target (no full (C,tm) int32 temp).
        cls = jax.lax.broadcasted_iota(jnp.int32, (C, 1), 0)
        picked_xm = jnp.sum(jnp.where(cls == tgt, xm, 0.0),
                            axis=0, keepdims=True)                    # (1, tm) = x[tgt]-m

        # per-pixel CE = lse - x[tgt] = log(sum_e) - picked_xm;
        # ignore_index / tail lanes -> exactly 0
        loss = jnp.where(valid, jnp.log(sum_e) - picked_xm, 0.0)      # (1, tm)

        # per-block partials of the `losses[losses != 0].mean()` reduction,
        # packed into one (sum, count) f32 pair (count <= tm < 2^24, exact).
        s = jnp.sum(loss, axis=1, keepdims=True)                       # (1, 1)
        c = jnp.sum((loss != 0.0).astype(jnp.float32), axis=1, keepdims=True)
        lane2 = jax.lax.broadcasted_iota(jnp.int32, (1, 2), 1)
        out_ref[...] = jnp.where(lane2 == 0, s, c).reshape(1, 1, 1, 2)

    return kernel


def cross_entropy_loss(score, target, *, tm=None, vmem_budget_bytes=None):
    """score: (N, C, H, W) float32/bf16, target: (N, H, W) int -> scalar f32."""
    N, C, H, W = score.shape
    HW = H * W

    # free reshapes: no transpose, no extra HBM pass; target keeps its stored
    # dtype (uint8/int16/int32) and is upcast inside the kernel.
    logits = score.reshape(N, C, HW)
    tgt = target.reshape(N, 1, HW)

    in_itemsize = jnp.dtype(score.dtype).itemsize
    sub_in = max(8, 32 // in_itemsize)                 # sublane tile: f32->8, bf16->16
    c_pad_in = -(-C // sub_in) * sub_in                # sublane-padded logits tile rows
    c_pad_f32 = -(-C // 8) * 8                         # padded rows of the f32 temps

    # --- generation-aware VMEM budget ---------------------------------------
    try:
        vmem_cap = pltpu.get_tpu_info().vmem_capacity_bytes
    except Exception:
        vmem_cap = 64 * _MIB                           # conservative (v7x-sized)
    if vmem_cap >= 96 * _MIB:                          # v5e / v6e: 128 MiB physical
        vmem_limit = 64 * _MIB
    else:                                              # v7x: 64 MiB per TensorCore
        vmem_limit = min(48 * _MIB, max(vmem_cap - 8 * _MIB, 16 * _MIB))
    if vmem_budget_bytes is None:
        vmem_budget_bytes = max(vmem_limit - 12 * _MIB, 8 * _MIB)

    # --- spatial tile (lanes per grid step) from the budget ------------------
    if tm is None:
        # bytes per lane (pixel) per grid step:
        #   2x double-buffered logits tile (real input dtype, sublane-padded C)
        # + 2x double-buffered target tile (<= int32, 1 row padded to 8 sublanes)
        # + ~3 full-tile f32 temporaries in the body (x-m, exp(x-m), one-hot select)
        per_lane = 2 * in_itemsize * c_pad_in + 2 * 4 * 8 + 3 * 4 * c_pad_f32
        tm = (vmem_budget_bytes // per_lane) // 128 * 128
        tm = int(max(128, min(tm, 256 * 1024)))        # cap to bound compile size

    if HW <= tm:
        tm, gj, need_tail = HW, 1, False               # full-extent block (always legal)
    else:
        tm = max(128, (tm // 128) * 128)
        gj = -(-HW // tm)                              # cdiv grid, no padding pass
        need_tail = (HW % tm) != 0                     # tail lanes masked in-kernel

    grid = (N, gj)

    partials = pl.pallas_call(
        _make_ce_kernel(HW, tm, need_tail),
        out_shape=jax.ShapeDtypeStruct((N, gj, 1, 2), jnp.float32),
        grid_spec=pltpu.PrefetchScalarGridSpec(
            num_scalar_prefetch=0,
            grid=grid,
            in_specs=[
                pl.BlockSpec((1, C, tm), lambda n, j: (n, 0, j)),   # logits
                pl.BlockSpec((1, 1, tm), lambda n, j: (n, 0, j)),   # target
            ],
            out_specs=pl.BlockSpec((1, 1, 1, 2), lambda n, j: (n, j, 0, 0)),
        ),
        compiler_params=pltpu.CompilerParams(
            dimension_semantics=("parallel", "parallel"),
            vmem_limit_bytes=vmem_limit,
        ),
    )(logits, tgt)

    total = jnp.sum(partials[..., 0])
    # per-block counts are exact integers in f32 (<= tm < 2^24); sum in int32.
    count = jnp.sum(partials[..., 1].astype(jnp.int32)).astype(jnp.float32)
    # NOTE: like the PyTorch reference, this is NaN if every loss is 0/ignored.
    return LOSS_WEIGHT * (total / count)


def _reference(score, target):
    # pure-JAX reference of F.cross_entropy(..., ignore_index, 'none') then
    # losses[losses != 0].mean()
    N, C, H, W = score.shape
    logits = jnp.transpose(score, (0, 2, 3, 1)).reshape(-1, C).astype(jnp.float32)
    tgt = target.reshape(-1)
    lse = jax.nn.logsumexp(logits, axis=-1)
    safe = jnp.where(tgt == IGNORE_LABEL, 0, tgt)
    picked = jnp.take_along_axis(logits, safe[:, None], axis=-1)[:, 0]
    loss = jnp.where(tgt == IGNORE_LABEL, 0.0, lse - picked)
    m = loss != 0.0
    return LOSS_WEIGHT * (jnp.sum(loss * m) / jnp.sum(m))


if __name__ == "__main__":
    key = jax.random.PRNGKey(0)

    def run_case(case_key, N, C, H, W, dtype=jnp.float32, tm=None,
                 atol=1e-5, rtol=1e-5):
        k1, k2, k3 = jax.random.split(case_key, 3)
        score = jax.random.normal(k1, (N, C, H, W), dtype=jnp.float32).astype(dtype)
        target = jax.random.randint(k2, (N, H, W), 0, C, dtype=jnp.int32)
        ignore_mask = jax.random.bernoulli(k3, 0.1, (N, H, W))
        target = jnp.where(ignore_mask, IGNORE_LABEL, target)

        out = jax.block_until_ready(cross_entropy_loss(score, target, tm=tm))
        ref = _reference(score, target)
        assert jnp.allclose(out, ref, atol=atol, rtol=rtol), (out, ref)

    k1, k2, k3, k4 = jax.random.split(key, 4)
    run_case(k1, 2, 4, 16, 16)                         # lane-aligned spatial extent
    run_case(k2, 2, 5, 10, 10)                         # odd extent -> full-extent tile
    run_case(k3, 2, 4, 17, 17, tm=128)                 # multi-step grid + in-kernel tail mask
    run_case(k4, 2, 4, 16, 16, dtype=jnp.bfloat16,     # bf16 logits path
             atol=3e-2, rtol=3e-2)

    print("KERNEL_OK")
</pallas_src>

<mosaic_0001>
module attributes {stable_mosaic.version = 11 : i64} {
  func.func @kernel(%arg0: i32, %arg1: i32, %arg2: memref<1x4x256xf32, #tpu.memory_space<vmem>>, %arg3: memref<1x1x256xi32, #tpu.memory_space<vmem>>, %arg4: memref<1x1x1x2xf32, #tpu.memory_space<vmem>>) attributes {dimension_semantics = [#tpu.dimension_semantics<parallel>, #tpu.dimension_semantics<parallel>], iteration_bounds = array<i64: 2, 1>, scalar_prefetch = 0 : i64, scratch_operands = 0 : i64, tpu.core_type = #tpu.core_type<tc>, window_params = [{transform_indices = @transform_0, window_bounds = array<i64: 1, 4, 256>}, {transform_indices = @transform_1, window_bounds = array<i64: 1, 1, 256>}, {transform_indices = @transform_2, window_bounds = array<i64: 1, 1, 1, 2>}]} {
    %c0 = arith.constant 0 : index
    %c0_0 = arith.constant 0 : index
    %c0_1 = arith.constant 0 : index
    %0 = vector.load %arg2[%c0, %c0_0, %c0_1] : memref<1x4x256xf32, #tpu.memory_space<vmem>>, vector<1x4x256xf32>
    %1 = vector.shape_cast %0 : vector<1x4x256xf32> to vector<4x256xf32>
    %c0_2 = arith.constant 0 : index
    %c0_3 = arith.constant 0 : index
    %c0_4 = arith.constant 0 : index
    %2 = vector.load %arg3[%c0_2, %c0_3, %c0_4] : memref<1x1x256xi32, #tpu.memory_space<vmem>>, vector<1x1x256xi32>
    %3 = vector.shape_cast %2 : vector<1x1x256xi32> to vector<1x256xi32>
    %c255_i32 = arith.constant 255 : i32
    %4 = vector.broadcast %c255_i32 : i32 to vector<1x256xi32>
    %5 = arith.cmpi ne, %3, %4 : vector<1x256xi32>
    %cst = arith.constant dense<0xFF800000> : vector<256xf32>
    %6 = vector.multi_reduction <maximumf>, %1, %cst [0] : vector<4x256xf32> to vector<256xf32>
    %7 = vector.shape_cast %6 : vector<256xf32> to vector<1x256xf32>
    %8 = vector.broadcast %7 : vector<1x256xf32> to vector<4x256xf32>
    %9 = arith.subf %1, %8 : vector<4x256xf32>
    %10 = math.exp %9 : vector<4x256xf32>
    %cst_5 = arith.constant dense<0.000000e+00> : vector<256xf32>
    %11 = vector.multi_reduction <add>, %10, %cst_5 [0] : vector<4x256xf32> to vector<256xf32>
    %12 = vector.shape_cast %11 : vector<256xf32> to vector<1x256xf32>
    %13 = tpu.iota {dimensions = array<i32: 0>} : vector<4x1xi32>
    %14 = vector.broadcast %13 : vector<4x1xi32> to vector<4x256xi32>
    %15 = vector.broadcast %3 : vector<1x256xi32> to vector<4x256xi32>
    %16 = arith.cmpi eq, %14, %15 : vector<4x256xi32>
    %cst_6 = arith.constant 0.000000e+00 : f32
    %17 = vector.broadcast %cst_6 : f32 to vector<4x256xf32>
    %18 = arith.select %16, %9, %17 : vector<4x256xi1>, vector<4x256xf32>
    %cst_7 = arith.constant dense<0.000000e+00> : vector<256xf32>
    %19 = vector.multi_reduction <add>, %18, %cst_7 [0] : vector<4x256xf32> to vector<256xf32>
    %20 = vector.shape_cast %19 : vector<256xf32> to vector<1x256xf32>
    %21 = math.log %12 : vector<1x256xf32>
    %22 = arith.subf %21, %20 : vector<1x256xf32>
    %cst_8 = arith.constant 0.000000e+00 : f32
    %23 = vector.broadcast %cst_8 : f32 to vector<1x256xf32>
    %24 = arith.select %5, %22, %23 : vector<1x256xi1>, vector<1x256xf32>
    %cst_9 = arith.constant dense<0.000000e+00> : vector<1xf32>
    %25 = vector.multi_reduction <add>, %24, %cst_9 [1] : vector<1x256xf32> to vector<1xf32>
    %26 = vector.shape_cast %25 : vector<1xf32> to vector<1x1xf32>
    %cst_10 = arith.constant 0.000000e+00 : f32
    %27 = vector.broadcast %cst_10 : f32 to vector<1x256xf32>
    %28 = arith.cmpf one, %24, %27 : vector<1x256xf32>
    %29 = arith.extui %28 : vector<1x256xi1> to vector<1x256xi32>
    %30 = arith.sitofp %29 : vector<1x256xi32> to vector<1x256xf32>
    %cst_11 = arith.constant dense<0.000000e+00> : vector<1xf32>
    %31 = vector.multi_reduction <add>, %30, %cst_11 [1] : vector<1x256xf32> to vector<1xf32>
    %32 = vector.shape_cast %31 : vector<1xf32> to vector<1x1xf32>
    %33 = tpu.iota {dimensions = array<i32: 1>} : vector<1x2xi32>
    %c0_i32 = arith.constant 0 : i32
    %34 = vector.broadcast %c0_i32 : i32 to vector<1x2xi32>
    %35 = arith.cmpi eq, %33, %34 : vector<1x2xi32>
    %36 = vector.shape_cast %26 : vector<1x1xf32> to vector<1x1xf32>
    %37 = vector.broadcast %36 : vector<1x1xf32> to vector<1x2xf32>
    %38 = vector.shape_cast %32 : vector<1x1xf32> to vector<1x1xf32>
    %39 = vector.broadcast %38 : vector<1x1xf32> to vector<1x2xf32>
    %40 = arith.select %35, %37, %39 : vector<1x2xi1>, vector<1x2xf32>
    %41 = vector.shape_cast %40 : vector<1x2xf32> to vector<1x1x1x2xf32>
    %c0_12 = arith.constant 0 : index
    %c0_13 = arith.constant 0 : index
    %c0_14 = arith.constant 0 : index
    %c0_15 = arith.constant 0 : index
    %42 = vector.load %arg4[%c0_12, %c0_13, %c0_14, %c0_15] : memref<1x1x1x2xf32, #tpu.memory_space<vmem>>, vector<1x1x1x2xf32>
    tpu.vector_store %arg4[%c0_12, %c0_13, %c0_14, %c0_15], %41 {strides = array<i32>} : memref<1x1x1x2xf32, #tpu.memory_space<vmem>>, vector<1x1x1x2xf32>,
    return
  }
  func.func @transform_0(%arg0: i32, %arg1: i32) -> (i32, i32, i32) {
    %c0_i32 = arith.constant 0 : i32
    %c0_i32_0 = arith.constant 0 : i32
    return %arg0, %c0_i32, %arg1 : i32, i32, i32
  }
  func.func @transform_1(%arg0: i32, %arg1: i32) -> (i32, i32, i32) {
    %c0_i32 = arith.constant 0 : i32
    %c0_i32_0 = arith.constant 0 : i32
    return %arg0, %c0_i32, %arg1 : i32, i32, i32
  }
  func.func @transform_2(%arg0: i32, %arg1: i32) -> (i32, i32, i32, i32) {
    %c0_i32 = arith.constant 0 : i32
    %c0_i32_0 = arith.constant 0 : i32
    %c0_i32_1 = arith.constant 0 : i32
    return %arg0, %arg1, %c0_i32, %c0_i32_0 : i32, i32, i32, i32
  }
}

</mosaic_0001>

<bundles_post_ra>
// kernel: tpu_custom_call.1
= control target key start
LH: loop header
LB: loop body
LE: loop exit
PB: predicated region body
PF: predicated region fallthrough
CT: control target
= control target key end

     0   :  { %7 = vsyncpa [#allocation3], 0  ;;  %s928_s0 = inlined_call_operand.hbm [shape: f32[2,4,256], index: 0, kind: input, shape index: {}]   ;;  %s929_s1 = inlined_call_operand.hbm [shape: s32[2,1,256], index: 1, kind: input, shape index: {}]   ;;  %s930_s2 = inlined_call_operand.hbm [shape: f32[2,1,1,2], index: 2, kind: output, shape index: {}]  }
   0x1   :  { %9 = vsyncpa [#allocation3 + $0x1], 0 }
   0x2   :  { %10 = vsyncpa [#allocation6], 0 }
   0x3   :  { %12 = vsyncpa [#allocation6 + $0x1], 0 }
   0x4   :  { %13 = vsyncpa [#allocation4], 0 }
   0x5   :  { %15 = vsyncpa [#allocation4 + $0x1], 0  ;;  %s739_s9 = smov 0   ;;  %s741_s10 = smov 0  }
   0x6   :  { %s743_s11 = smov 0   ;;  %s745_s12 = smov 0  }
   0x7   :  { %s747_s13 = smov 0   ;;  %s749_s14 = smov 0  }
   0x8 LB: > { %s482_s15 = sadd.s32 4294967295, %s717_s14   ;;  %s483_s16 = sadd.s32 4294967294, %s717_s14   ;;  %s717_s14 = sphi %s749_s14, %s21_s14   ;;  %s713_s13 = sphi %s747_s13, %s942_s13   ;;  %s709_s12 = sphi %s745_s12, %s941_s12   ;;  %s705_s11 = sphi %s743_s11, %s940_s11   ;;  %s701_s10 = sphi %s741_s10, %s939_s10   ;;  %s697_s9 = sphi %s739_s9, %s938_s9  }
   0x9   : > { %s33_s17 = sadd.s32 1, %s713_s13  ;;  %s42_s18 = sadd.s32 1, %s705_s11 }
   0xa   : > { %p35_p0 = scmp.ge.s32.totalorder %s33_s17, 2  ;;  %p49_p1 = scmp.ne.s32.totalorder %s705_s11, %s701_s10 }
   0xb   : > { %p50_p2 = scmp.eq.s32.totalorder %s717_s14, 0  ;;  %p55_p3 = scmp.ne.s32.totalorder %s701_s10, %s697_s9 }
   0xc   : > { %s944_s17 = smov (%p35_p0, %s33_s17), 0  ;;  %p56_p5 = scmp.eq.s32.totalorder %s482_s15, 0 }
   0xd   : > { %p780_p4 = por %p50_p2, %p49_p1  ;;  %s37_s20 = ssub.s32 %s713_s13, %s944_s17 }
   0xe   : > { %p109_p6 = scmp.eq.s32.totalorder %s482_s15, 1  ;;  %p40_p7 = scmp.eq.s32.totalorder %s37_s20, 0 }
   0xf   : > { %p786_p8 = por %p56_p5, %p55_p3  ;;  %p115_p10 = scmp.eq.s32.totalorder %s483_s16, 1 }
  0x10   : > { %p790_p9 = por %p109_p6, %p49_p1  ;;  %p518_p13 = scmp.lt.s32.totalorder %s717_s14, 2 }
  0x11   : > { %s795_s23 = scalar_select %p40_p7, %s705_s11, %s42_s18  }
  0x12   : > { %p797_p11 = por %p115_p10, %p55_p3  ;;  %s804_s25 = sand.u32 1, %s705_s11  }
  0x13   : > { %s486_s26 = sshll.u32 %s804_s25, 3  ;;  %s499_s27 = sshll.u32 %s713_s13, 7 }
  0x14   : > { %s147_s30 = scalar_lea.hbm %s928_s0, %s499_s27  ;;  %s139_s3 = scalar_lea.vmem [#allocation2], %s486_s26 }
  0x15   : > { %s149_s4 = sshll.u32 %s139_s3, 4  ;;  %p813_p0 = pnand %p518_p13, %p780_p4  ;;  %s150_s4 = int_to_ptr.vmem [resolvable:$true] %s149_s4 }
  0x16   : > { %p492_p1 = scmp.ge.s32.totalorder %s717_s14, 1  ;;  %p175_p2 = scmp.lt.s32.totalorder %s717_s14, 3 }
  0x17   : > { %s136_s6 = scalar_lea.sflag [#allocation3], %s804_s25  ;;  %p579_p3 = pneg %p813_p0 }
  0x18   : > { %s590_s7 = scalar_lea.vmem %s150_s4, 128  ;;  %s719_s8 = smov [#allocation2]  }
  0x19   : > { %p591_p5 = scmp.ne.s32.totalorder %s150_s4, %s590_s7  ;;  %s595_s15 = sshll.u32 %s719_s8, 4  ;;  %s596_s15 = int_to_ptr.vmem [resolvable:$false] %s595_s15 }
  0x1a   : > { %s597_s16 = scalar_lea.vmem %s596_s15, 256  ;;  %p598_p4 = scmp.lt.s32.totalorder %s150_s4, %s596_s15 }
  0x1b   : > { %p593_p6 = pnand %p591_p5, %p579_p3  ;;  %p599_p10 = scmp.lt.s32.totalorder %s597_s16, %s590_s7 }
  0x1d   : > { %p594_p7 = pneg %p593_p6  ;;  %p600_p13 = por %p599_p10, %p598_p4 }
  0x1f   : > { %p601_p12 = pnand %p600_p13, %p594_p7 }
  0x21   : > { %604 = shalt.err (!%p601_p12)
}
  0x22   : > { %510 = dma.hbm_to_vmem [thread:$0]  (!%p813_p0), %s147_s30, 128, %s150_s4, %s136_s6  }
  0x23   : > { %p831_p5 = pnand %p492_p1, %p175_p2  ;;  %s489_s19 = sshll.u32 %s804_s25, 1 }
  0x24   : > { %s500_s20 = sshll.u32 %s713_s13, 5  ;;  %s160_s29 = scalar_lea.vmem [#allocation5], %s489_s19 }
  0x25   : > { %s168_s28 = scalar_lea.hbm %s929_s1, %s500_s20  ;;  %s170_s3 = sshll.u32 %s160_s29, 4  ;;  %s171_s3 = int_to_ptr.vmem [resolvable:$true] %s170_s3 }
  0x26   : > { %s157_s7 = scalar_lea.sflag [#allocation6], %s804_s25  ;;  %s618_s8 = scalar_lea.vmem %s171_s3, 32 }
  0x27   : > { %p619_p12 = scmp.ne.s32.totalorder %s171_s3, %s618_s8  ;;  %s720_s30 = smov [#allocation5]  }
  0x28   : > { %s623_s4 = sshll.u32 %s720_s30, 4  ;;  %s624_s4 = int_to_ptr.vmem [resolvable:$false] %s623_s4 }
  0x29   : > { %p621_p6 = pnand %p619_p12, %p579_p3  ;;  %s625_s6 = scalar_lea.vmem %s624_s4, 64 }
  0x2a   : > { %p626_p1 = scmp.lt.s32.totalorder %s171_s3, %s624_s4  ;;  %p627_p2 = scmp.lt.s32.totalorder %s625_s6, %s618_s8 }
  0x2b   : > { %p622_p7 = pneg %p621_p6 }
  0x2c   : > { %p628_p4 = por %p627_p2, %p626_p1 }
  0x2e   : > { %p629_p10 = pnand %p628_p4, %p622_p7 }
  0x30   : > { %632 = shalt.err (!%p629_p10)
}
  0x31   : > { %513 = dma.hbm_to_vmem [thread:$0]  (!%p813_p0), %s168_s28, 32, %s171_s3, %s157_s7  }
  0x32   : > { %179 = sbr.rel (%p831_p5) target bundleno = 296 (0x128), region = 28  ;;  %s849_s25 = sand.u32 (!%p831_p5), 1, %s701_s10  }
  0x33   : > { %s493_s15 = sshll.u32 (!%p831_p5), %s849_s25, 3  ;;  %s182_s16 = scalar_lea.sflag (!%p831_p5), [#allocation3], %s849_s25 }
  0x34   : > { %s185_s19 = scalar_lea.vmem (!%p831_p5), [#allocation2], %s493_s15 }
  0x37   : > { %684 = dma.done.wait (%p786_p8), %s182_s16, 128  }
  0x38   : > { %686 = vsyncadd (%p786_p8), %s182_s16, 4294967168  ;;  %s494_s5 = sshll.u32 %s849_s25, 1  ;;  %s191_s18 = scalar_lea.sflag [#allocation6], %s849_s25 }
  0x39   : > { %s194_s20 = scalar_lea.vmem [#allocation5], %s494_s5 }
  0x3a   : > { %688 = dma.done.wait (%p786_p8), %s191_s18, 32  }
  0x3b   : > { %690 = vsyncadd (%p786_p8), %s191_s18, 4294967264  ;;  %vm227_vm0 = vcmask 1043456   ;;  %v221_v0 = vld [vmem:[%s185_s19] sm:$0xff]  ;;  %v266_v17 = vlaneseq  ;;  %v222_v22 = vld [vmem:[%s194_s20] sm:$0x3]  ;;  %vm333_vm4 = vcmask 1040384  }
  0x3c   : > { %v225_v1 = vcombine.high %v221_v0, %v221_v0  ;;  %v228_v2 = vsel %vm227_vm0, %v221_v0, -inf  ;;  %v721_v57 = vmov 1966171168   ;;  %vm223_vm3 = vcmp.ne.s32.totalorder %v222_v22, 255  ;;  %s496_s21 = sshll.u32 %s709_s12, 4  ;;  %s218_s26 = scalar_lea.vmem [#allocation7], %s849_s25 }
  0x3d   : > { %v229_v3 = vrot.slane %v228_v2, 4  ;;  %v267_v20 = vshrl.u32 %v266_v17, 7  ;;  %v307_v58 = vunpack.c.l.s4 %v721_v57  ;;  %s378_s27 = sshll.u32 %s218_s26, 4  ;;  %vm362_vm7 = vcmask 8192   ;;  %s886_s3 = scalar_lea.hbm %s930_s2, %s496_s21  ;;  %s379_s27 = int_to_ptr.vmem [resolvable:$true] %s378_s27 }
  0x3e   : > { %v235_v4 = vsel %vm227_vm0, %v225_v1, -inf  ;;  %s365_s7 = scalar_lea.sflag [#allocation4], %s849_s25  ;;  %s633_s8 = scalar_lea.vmem %s379_s27, 16 }
  0x3f   : > { %v230_v5 = vmax.f32 %v228_v2, %v229_v3  ;;  %v236_v6 = vrot.slane %v235_v4, 4  ;;  %v866_v21 = vsub.s32 0, %v267_v20  ;;  %v868_v23 = vsub.s32 1, %v267_v20  ;;  %p634_p8 = scmp.ne.s32.totalorder %s379_s27, %s633_s8  ;;  %s723_s12 = smov [#allocation7]  }
  0x40   : > { %v308_v63 = vunpack.c.0.s8 %v307_v58  ;;  %s637_s30 = sshll.u32 %s723_s12, 4  ;;  %s638_s30 = int_to_ptr.vmem [resolvable:$false] %s637_s30 }
  0x41   : > { %v231_v7 = vrot.slane %v230_v5, 2  ;;  %v237_v8 = vmax.f32 %v235_v4, %v236_v6  ;;  %v271_v24 = vrot.slane %v222_v22, %v866_v21  ;;  %v275_v25 = vrot.slane %v222_v22, %v868_v23  ;;  %p635_p0 = pnand %p634_p8, %p790_p9  ;;  %s639_s4 = scalar_lea.vmem %s638_s30, 32 }
  0x42   : > { %v311_v4 = vsub.s32 %v308_v63, %v267_v20  ;;  %p640_p13 = scmp.lt.s32.totalorder %s379_s27, %s638_s30  ;;  %p641_p5 = scmp.lt.s32.totalorder %s639_s4, %s633_s8 }
  0x43   : > { %v232_v9 = vmax.f32 %v230_v5, %v231_v7  ;;  %v238_v10 = vrot.slane %v237_v8, 2  ;;  %vm276_vm1 = vcmp.eq.s32.totalorder %v267_v20, %v271_v24  ;;  %vm277_vm2 = vcmp.eq.s32.totalorder %v267_v20, %v275_v25  ;;  %p636_p3 = pneg %p635_p0 }
  0x44   : > { %v359_v24 = vand.u32 127, %v266_v17  ;;  %p642_p12 = por %p641_p5, %p640_p13 }
  0x45   : > { %v233_v11 = vrot.slane %v232_v9, 1  ;;  %v239_v12 = vmax.f32 %v237_v8, %v238_v10 }
  0x46   : > { %vm360_vm6 = vcmp.eq.s32.totalorder %v359_v24, 0  ;;  %p643_p6 = pnand %p642_p12, %p636_p3 }
  0x47   : > { %v234_v13 = vmax.f32 %v232_v9, %v233_v11  ;;  %v240_v14 = vrot.slane %v239_v12, 1  ;;  %v722_v11 = vmov 0.0  }
  0x49   : > { %v241_v15 = vmax.f32 %v239_v12, %v240_v14 }
  0x4b   : > { %v244_v16 = vcombine.low %v234_v13, %v241_v15 }
  0x4d   : > { %v246_v18 = vsub.f32 %v221_v0, %v244_v16 }
  0x4f   : > { %v247_v19 = vmul.f32 1.442695, %v246_v18  ;;  %v279_v26 = vcombine.high %v246_v18, %v246_v18  ;;  %v281_v28 = vsel %vm276_vm1, %v246_v18, 0.0 }
  0x50   : > { %v283_v34 = vsel %vm227_vm0, %v281_v28, 0.0 }
  0x51   : > { %571 = vpow2.f32 %v247_v19  ;;  %v282_v32 = vsel %vm277_vm2, %v279_v26, 0.0  ;;  %v284_v40 = vrot.slane %v283_v34, 4 }
  0x52   : > { %v290_v37 = vsel %vm227_vm0, %v282_v32, 0.0 }
  0x53   : > { %v291_v43 = vrot.slane %v290_v37, 4  ;;  %v285_v46 = vadd.f32 %v284_v40, %v283_v34 }
  0x55   : > { %v292_v49 = vadd.f32 %v291_v43, %v290_v37  ;;  %v286_v51 = vrot.slane %v285_v46, 2 }
  0x57   : > { %v293_v52 = vrot.slane %v292_v49, 2  ;;  %v287_v53 = vadd.f32 %v286_v51, %v285_v46 }
  0x59   : > { %v294_v54 = vadd.f32 %v293_v52, %v292_v49  ;;  %v288_v55 = vrot.slane %v287_v53, 1 }
  0x5b   : > { %v295_v56 = vrot.slane %v294_v54, 1  ;;  %v289_v59 = vadd.f32 %v288_v55, %v287_v53 }
  0x5d   : > { %v296_v61 = vadd.f32 %v295_v56, %v294_v54 }
  0x5e   : > { %v572_v27 = vpop.eup %571 }
  0x5f   : > { %v250_v29 = vcombine.high %v572_v27, %v572_v27  ;;  %v252_v30 = vsel %vm227_vm0, %v572_v27, 0.0 }
  0x60   : > { %v253_v31 = vrot.slane %v252_v30, 4 }
  0x61   : > { %v259_v33 = vsel %vm227_vm0, %v250_v29, 0.0 }
  0x62   : > { %v254_v35 = vadd.f32 %v253_v31, %v252_v30  ;;  %v260_v36 = vrot.slane %v259_v33, 4 }
  0x64   : > { %v255_v38 = vrot.slane %v254_v35, 2  ;;  %v261_v39 = vadd.f32 %v260_v36, %v259_v33 }
  0x66   : > { %v256_v41 = vadd.f32 %v255_v38, %v254_v35  ;;  %v262_v42 = vrot.slane %v261_v39, 2 }
  0x68   : > { %v257_v44 = vrot.slane %v256_v41, 1  ;;  %v263_v45 = vadd.f32 %v262_v42, %v261_v39 }
  0x6a   : > { %v258_v47 = vadd.f32 %v257_v44, %v256_v41  ;;  %v264_v48 = vrot.slane %v263_v45, 1 }
  0x6c   : > { %v265_v50 = vadd.f32 %v264_v48, %v263_v45  ;;  %573 = vlog2.f32 %v258_v47 }
  0x6e   : > { %575 = vlog2.f32 %v265_v50 }
  0x79   : > { %v574_v60 = vpop.eup %573 }
  0x7a   : > { %v298_v62 = vmul.f32 0.6931472, %v574_v60 }
  0x7b   : > { %v576_v0 = vpop.eup %575 }
  0x7c   : > { %v300_v1 = vmul.f32 0.6931472, %v576_v0  ;;  %v301_v2 = vsub.f32 %v298_v62, %v289_v59 }
  0x7e   : > { %v302_v3 = vsub.f32 %v300_v1, %v296_v61 }
  0x80   : > { %v305_v5 = vcombine.low %v301_v2, %v302_v3 }
  0x82   : > { %v312_v6 = vrot.slane %v305_v5, %v311_v4 }
  0x84   : > { %v319_v7 = vrot.slane %v312_v6, %v311_v4 }
  0x86   : > { %v321_v8 = vsel %vm223_vm3, %v319_v7, 0.0 }
  0x87   : > { %v326_v9 = vrot.slane %v321_v8, %v866_v21  ;;  %v330_v10 = vrot.slane %v321_v8, %v868_v23  ;;  %vm339_vm5 = vcmp.ne.f32.partialorder %v321_v8, 0.0 }
  0x88   : > { %v495_v12 = vsel %vm339_vm5, 1.0, %v722_v11 }
  0x89   : > { %v334_v13 = vsel %vm333_vm4, %v326_v9, 0.0  ;;  %v335_v14 = vsel %vm333_vm4, %v330_v10, 0.0  ;;  %v346_v15 = vrot.slane %v495_v12, %v866_v21  ;;  %v350_v16 = vrot.slane %v495_v12, %v868_v23 }
  0x8a   : > { %v336_v18 = vadd.f32 %v335_v14, %v334_v13 }
  0x8b   : > { %v353_v19 = vsel %vm333_vm4, %v346_v15, 0.0  ;;  %v354_v20 = vsel %vm333_vm4, %v350_v16, 0.0 }
  0x8c   : > { %337 = vadd.xlane.f32.xlu0 %v336_v18  ;;  %v355_v22 = vadd.f32 %v354_v20, %v353_v19 }
  0x90   : > { %356 = vadd.xlane.f32.xlu0 %v355_v22 }
 0x115   : > { %v338_v25 = vpop.xlane.xlu0 %337 }
 0x119   : > { %v357_v26 = vpop.xlane.xlu0 %356 }
 0x11a   : > { %v361_v21 = vsel %vm360_vm6, %v338_v25, %v357_v26 }
 0x11b   : > { %363 = vst.msk [vmem:[%s218_s26] sm:$0x1] %vm362_vm7, %v361_v21 }
 0x11c   : > { %646 = shalt.err (!%p643_p6)
}
 0x11d   : > { %s647_s6 = scalar_lea.hbm %s886_s3, 16  ;;  %s651_s16 = scalar_lea.hbm %s930_s2, 32 }
 0x11e   : > { %p648_p7 = scmp.ne.s32.totalorder %s886_s3, %s647_s6  ;;  %p652_p4 = scmp.lt.s32.totalorder %s886_s3, %s930_s2 }
 0x11f   : > { %p653_p10 = scmp.lt.s32.totalorder %s651_s16, %s647_s6 }
 0x120   : > { %p649_p1 = pnand %p648_p7, %p790_p9 }
 0x121   : > { %p654_p8 = por %p653_p10, %p652_p4 }
 0x122   : > { %p650_p2 = pneg %p649_p1 }
 0x124   : > { %p655_p0 = pnand %p654_p8, %p650_p2 }
 0x126   : > { %658 = shalt.err (!%p655_p0)
}
 0x127   : > { %505 = dma.vmem_to_hbm [thread:$0]  (%p790_p9), %s379_s27, 16, %s886_s3, %s365_s7  }
 0x128 PF: > { %s390_s18 = sand.u32 1, %s697_s9   ;;  %p937_p3 = scmp.ge.s32.totalorder %s717_s14, 2 }
 0x129   : > { %s391_s20 = scalar_lea.sflag [#allocation4], %s390_s18 }
 0x12a   : > { %p515_p13 = pnand %p937_p3, %p797_p11 }
 0x12c   : > { %p516_p5 = pneg %p515_p13 }
 0x12e   : > { %692 = dma.done.wait (%p516_p5), %s391_s20, 16  }
 0x12f   : > { %694 = vsyncadd (%p516_p5), %s391_s20, 4294967280  ;;  %s21_s14 = sadd.s32 1, %s717_s14   ;;  %s938_s9 = smov %s701_s10 }
 0x130   : > { %p18_p12 = scmp.ge.s32.totalorder %s21_s14, 4   ;;  %s939_s10 = smov %s705_s11 }
 0x131   : > { %s940_s11 = smov %s795_s23  ;;  %s941_s12 = smov %s713_s13 }
 0x132   : > { %s942_s13 = smov %s944_s17  ;;  %20 = sbr.rel (!%p18_p12) target bundleno = 8 (0x8), region = 86 }
 0x137   :  { %395 = vsyncpa [#allocation3], 1 }
 0x138   :  { %397 = vsyncpa [#allocation3 + $0x1], 1 }
 0x139   :  { %398 = vsyncpa [#allocation6], 1 }
 0x13a   :  { %400 = vsyncpa [#allocation6 + $0x1], 1 }
 0x13b   :  { %401 = vsyncpa [#allocation4], 1 }
 0x13c   :  { %403 = vsyncpa [#allocation4 + $0x1], 1 }

</bundles_post_ra>
